<compile_context>
chip_gen: v7x
topology: tpu7x:2x2x1
jax: 0.10.0
libtpu: 0.0.40
codegen_flags: <defaults>
</compile_context>

<pallas_src>
import math

import jax
import jax.numpy as jnp
from jax.experimental import pallas as pl
from jax.experimental.pallas import tpu as pltpu

_INV_SQRT2 = 1.0 / math.sqrt(2.0)


def _gelu_exact(x):
    # nn.GELU() default = exact erf-based GELU (f32 math).
    return 0.5 * x * (1.0 + jax.lax.erf(x * _INV_SQRT2))


# ----------------------------------------------------------------------------
# Kernel body: one (row-block, F-tile) grid step.
#   x_ref  : (TM, E)   input rows (input dtype, cast to bf16 for the MXU)
#   w1_ref : (E, tF)   bf16 slice of W1^T
#   b1_ref : (1, tF)   f32
#   w2_ref : (tF, E)   bf16 slice of W2^T
#   b2_ref : (1, E)    f32
#   out_ref: (TM, E)
#   acc_ref: (TM, E)   f32 scratch accumulator over the F-tile (k) axis
# ----------------------------------------------------------------------------
def ffn_kernel(x_ref, w1_ref, b1_ref, w2_ref, b2_ref, out_ref, acc_ref):
    k = pl.program_id(1)

    @pl.when(k == 0)
    def _():
        acc_ref[...] = jnp.zeros_like(acc_ref)

    x = x_ref[...].astype(jnp.bfloat16)                      # bf16 MXU operand
    h = jnp.dot(x, w1_ref[...], preferred_element_type=jnp.float32)
    h = _gelu_exact(h + b1_ref[...])                         # (TM, tF) f32
    # TODO(synk): training-mode dropout (p > 0) would need pltpu.prng_seed /
    # pltpu.prng_random_bits masking here; p = 0.0 (eval) is identity.
    acc_ref[...] += jnp.dot(h.astype(jnp.bfloat16), w2_ref[...],
                            preferred_element_type=jnp.float32)

    @pl.when(k == pl.num_programs(1) - 1)
    def _():
        out_ref[...] = (acc_ref[...] + b2_ref[...]).astype(out_ref.dtype)


# ----------------------------------------------------------------------------
# Wrapper: flatten leading dims, tile rows (parallel) and hidden dim (arbitrary).
# ----------------------------------------------------------------------------
def _round_up(n, m):
    return ((n + m - 1) // m) * m


def _pick_tf(F, max_tf=512):
    """Largest lane-aligned divisor of F up to max_tf (bounds VMEM on v7x)."""
    if F <= max_tf:
        return F
    for cand in (512, 384, 256, 128):
        if cand <= max_tf and F % cand == 0:
            return cand
    return F  # fall back to full-F residency (fine for small/odd F)


def linear_projection(x, params, *, target_rows=512, max_tf=512):
    """x: (..., embed_dim) -> same shape. Eval mode (dropout = identity)."""
    w1_t = params["w1_t"]            # (E, F)  bf16  = W1.T
    b1 = params["b1"]                # (1, F)  f32
    w2_t = params["w2_t"]            # (F, E)  bf16  = W2.T
    b2 = params["b2"]                # (1, E)  f32
    E, F = w1_t.shape

    orig_shape = x.shape
    N = math.prod(orig_shape[:-1])
    x2 = x.reshape(N, E)

    # Row blocks: big enough to amortize per-step overhead and fill the MXU's
    # M dimension; no jnp.pad — a ragged last block is handled by the pipeline.
    block_rows = min(target_rows, _round_up(N, 8))
    grid_rows = pl.cdiv(N, block_rows)

    tF = _pick_tf(F, max_tf)
    grid_k = F // tF

    out2 = pl.pallas_call(
        ffn_kernel,
        out_shape=jax.ShapeDtypeStruct((N, E), x.dtype),
        grid_spec=pltpu.PrefetchScalarGridSpec(
            num_scalar_prefetch=0,
            grid=(grid_rows, grid_k),
            in_specs=[
                pl.BlockSpec((block_rows, E), lambda i, k: (i, 0)),   # x rows
                pl.BlockSpec((E, tF),         lambda i, k: (0, k)),   # W1^T tile
                pl.BlockSpec((1, tF),         lambda i, k: (0, k)),   # b1 tile
                pl.BlockSpec((tF, E),         lambda i, k: (k, 0)),   # W2^T tile
                pl.BlockSpec((1, E),          lambda i, k: (0, 0)),   # b2
            ],
            out_specs=pl.BlockSpec((block_rows, E), lambda i, k: (i, 0)),
            scratch_shapes=[pltpu.VMEM((block_rows, E), jnp.float32)],
        ),
        compiler_params=pltpu.CompilerParams(
            dimension_semantics=("parallel", "arbitrary"),
            vmem_limit_bytes=64 * 1024 * 1024,
        ),
    )(x2, w1_t, b1, w2_t, b2)

    return out2.reshape(orig_shape)


# ----------------------------------------------------------------------------
# Deterministic parameter init (xavier_uniform weights, small uniform biases).
# PyTorch nn.Linear weights are (out, in); pre-transpose for y = x @ W.T + b.
# Weights are stored in bf16 (MXU-native, half DMA/VMEM); biases stay f32.
# ----------------------------------------------------------------------------
def xavier_uniform(key, shape):
    fan_out, fan_in = shape
    bound = math.sqrt(6.0 / (fan_in + fan_out))
    return jax.random.uniform(key, shape, jnp.float32, -bound, bound)


def make_params(key, E, F):
    k1, k2, k3, k4 = jax.random.split(key, 4)
    w1 = xavier_uniform(k1, (F, E))
    w2 = xavier_uniform(k2, (E, F))
    b1 = jax.random.uniform(k3, (1, F), jnp.float32, -0.1, 0.1)
    b2 = jax.random.uniform(k4, (1, E), jnp.float32, -0.1, 0.1)
    return {
        "w1_t": w1.T.astype(jnp.bfloat16),
        "b1": b1,
        "w2_t": w2.T.astype(jnp.bfloat16),
        "b2": b2,
    }


# ----------------------------------------------------------------------------
# Pure-JAX reference (mirrors PyTorch LinearProjection forward, eval mode),
# computed in f32 with the same (bf16-quantized) weight values.
# ----------------------------------------------------------------------------
def ref_linear_projection(x, params):
    w1 = params["w1_t"].astype(jnp.float32)
    w2 = params["w2_t"].astype(jnp.float32)
    h = x @ w1 + params["b1"]
    h = jax.nn.gelu(h, approximate=False)
    return h @ w2 + params["b2"]


# ----------------------------------------------------------------------------
if __name__ == "__main__":
    # Small shapes; E chosen as a multiple of 128 so the output tile is
    # lane-dense (biggest single layout lever per the perf notes).
    B, S, E, F = 2, 8, 128, 256

    key = jax.random.PRNGKey(0)
    kx, kp = jax.random.split(key)
    x = jax.random.normal(kx, (B, S, E), jnp.float32)
    params = make_params(kp, E, F)

    out = linear_projection(x, params)
    out = jax.block_until_ready(out)

    ref = ref_linear_projection(x, params)
    assert out.shape == (B, S, E)
    # Tolerance accounts for bf16 MXU operands (x / GELU intermediate rounding).
    assert jnp.allclose(out, ref, atol=2e-2, rtol=2e-2), "mismatch vs reference"

    print("KERNEL_OK")
</pallas_src>

<mosaic_0001>
module attributes {stable_mosaic.version = 11 : i64} {
  func.func @ffn_kernel(%arg0: i32, %arg1: i32, %arg2: memref<16x128xf32, #tpu.memory_space<vmem>>, %arg3: memref<128x256xbf16, #tpu.memory_space<vmem>>, %arg4: memref<1x256xf32, #tpu.memory_space<vmem>>, %arg5: memref<256x128xbf16, #tpu.memory_space<vmem>>, %arg6: memref<1x128xf32, #tpu.memory_space<vmem>>, %arg7: memref<16x128xf32, #tpu.memory_space<vmem>>, %arg8: memref<16x128xf32, #tpu.memory_space<vmem>>) attributes {dimension_semantics = [#tpu.dimension_semantics<parallel>, #tpu.dimension_semantics<arbitrary>], iteration_bounds = array<i64: 1, 1>, scalar_prefetch = 0 : i64, scratch_operands = 1 : i64, tpu.core_type = #tpu.core_type<tc>, window_params = [{transform_indices = @transform_0, window_bounds = array<i64: 16, 128>}, {transform_indices = @transform_1, window_bounds = array<i64: 128, 256>}, {transform_indices = @transform_2, window_bounds = array<i64: 1, 256>}, {transform_indices = @transform_3, window_bounds = array<i64: 256, 128>}, {pipeline_mode = #tpu.pipeline_mode<synchronous>, transform_indices = @transform_4, window_bounds = array<i64: 1, 128>}, {transform_indices = @transform_5, window_bounds = array<i64: 16, 128>}]} {
    %c0_i32 = arith.constant 0 : i32
    %0 = arith.cmpi eq, %arg1, %c0_i32 : i32
    %1 = arith.extui %0 : i1 to i32
    %c0_i32_0 = arith.constant 0 : i32
    %2 = arith.cmpi ne, %1, %c0_i32_0 : i32
    scf.if %2 {
      %cst_18 = arith.constant 0.000000e+00 : f32
      %27 = vector.broadcast %cst_18 : f32 to vector<16x128xf32>
      %c0_19 = arith.constant 0 : index
      %c0_20 = arith.constant 0 : index
      %28 = vector.load %arg8[%c0_19, %c0_20] : memref<16x128xf32, #tpu.memory_space<vmem>>, vector<16x128xf32>
      tpu.vector_store %arg8[%c0_19, %c0_20], %27 {strides = array<i32>} : memref<16x128xf32, #tpu.memory_space<vmem>>, vector<16x128xf32>,
    } else {
    }
    %c0 = arith.constant 0 : index
    %c0_1 = arith.constant 0 : index
    %3 = vector.load %arg2[%c0, %c0_1] : memref<16x128xf32, #tpu.memory_space<vmem>>, vector<16x128xf32>
    %4 = arith.truncf %3 : vector<16x128xf32> to vector<16x128xbf16>
    %c0_2 = arith.constant 0 : index
    %c0_3 = arith.constant 0 : index
    %5 = vector.load %arg3[%c0_2, %c0_3] : memref<128x256xbf16, #tpu.memory_space<vmem>>, vector<128x256xbf16>
    %cst = arith.constant dense<0.000000e+00> : vector<16x256xf32>
    %6 = tpu.matmul %4, %5, %cst {dimension_numbers = #tpu.dot_dimension_numbers<[1], [0], [0], [1], [0, 0, 1, 1], [], []>} : vector<16x128xbf16>, vector<128x256xbf16>, vector<16x256xf32> -> vector<16x256xf32>
    %c0_4 = arith.constant 0 : index
    %c0_5 = arith.constant 0 : index
    %7 = vector.load %arg4[%c0_4, %c0_5] : memref<1x256xf32, #tpu.memory_space<vmem>>, vector<1x256xf32>
    %8 = vector.broadcast %7 : vector<1x256xf32> to vector<16x256xf32>
    %9 = arith.addf %6, %8 : vector<16x256xf32>
    %cst_6 = arith.constant 5.000000e-01 : f32
    %10 = vector.broadcast %cst_6 : f32 to vector<16x256xf32>
    %11 = arith.mulf %10, %9 : vector<16x256xf32>
    %cst_7 = arith.constant 0.707106769 : f32
    %12 = vector.broadcast %cst_7 : f32 to vector<16x256xf32>
    %13 = arith.mulf %9, %12 : vector<16x256xf32>
    %14 = math.erf %13 : vector<16x256xf32>
    %cst_8 = arith.constant 1.000000e+00 : f32
    %15 = vector.broadcast %cst_8 : f32 to vector<16x256xf32>
    %16 = arith.addf %15, %14 : vector<16x256xf32>
    %17 = arith.mulf %11, %16 : vector<16x256xf32>
    %c0_9 = arith.constant 0 : index
    %c0_10 = arith.constant 0 : index
    %18 = vector.load %arg8[%c0_9, %c0_10] : memref<16x128xf32, #tpu.memory_space<vmem>>, vector<16x128xf32>
    %19 = arith.truncf %17 : vector<16x256xf32> to vector<16x256xbf16>
    %c0_11 = arith.constant 0 : index
    %c0_12 = arith.constant 0 : index
    %20 = vector.load %arg5[%c0_11, %c0_12] : memref<256x128xbf16, #tpu.memory_space<vmem>>, vector<256x128xbf16>
    %cst_13 = arith.constant dense<0.000000e+00> : vector<16x128xf32>
    %21 = tpu.matmul %19, %20, %cst_13 {dimension_numbers = #tpu.dot_dimension_numbers<[1], [0], [0], [1], [0, 0, 1, 1], [], []>} : vector<16x256xbf16>, vector<256x128xbf16>, vector<16x128xf32> -> vector<16x128xf32>
    %22 = arith.addf %18, %21 : vector<16x128xf32>
    %c0_14 = arith.constant 0 : index
    %c0_15 = arith.constant 0 : index
    %23 = vector.load %arg8[%c0_14, %c0_15] : memref<16x128xf32, #tpu.memory_space<vmem>>, vector<16x128xf32>
    tpu.vector_store %arg8[%c0_14, %c0_15], %22 {strides = array<i32>} : memref<16x128xf32, #tpu.memory_space<vmem>>, vector<16x128xf32>,
    %c0_i32_16 = arith.constant 0 : i32
    %24 = arith.cmpi eq, %arg1, %c0_i32_16 : i32
    %25 = arith.extui %24 : i1 to i32
    %c0_i32_17 = arith.constant 0 : i32
    %26 = arith.cmpi ne, %25, %c0_i32_17 : i32
    scf.if %26 {
      %c0_18 = arith.constant 0 : index
      %c0_19 = arith.constant 0 : index
      %27 = vector.load %arg8[%c0_18, %c0_19] : memref<16x128xf32, #tpu.memory_space<vmem>>, vector<16x128xf32>
      %c0_20 = arith.constant 0 : index
      %c0_21 = arith.constant 0 : index
      %28 = vector.load %arg6[%c0_20, %c0_21] : memref<1x128xf32, #tpu.memory_space<vmem>>, vector<1x128xf32>
      %29 = vector.broadcast %28 : vector<1x128xf32> to vector<16x128xf32>
      %30 = arith.addf %27, %29 : vector<16x128xf32>
      %c0_22 = arith.constant 0 : index
      %c0_23 = arith.constant 0 : index
      %31 = vector.load %arg7[%c0_22, %c0_23] : memref<16x128xf32, #tpu.memory_space<vmem>>, vector<16x128xf32>
      tpu.vector_store %arg7[%c0_22, %c0_23], %30 {strides = array<i32>} : memref<16x128xf32, #tpu.memory_space<vmem>>, vector<16x128xf32>,
    } else {
    }
    return
  }
  func.func @transform_0(%arg0: i32, %arg1: i32) -> (i32, i32) {
    %c0_i32 = arith.constant 0 : i32
    %c0_i32_0 = arith.constant 0 : i32
    return %arg0, %c0_i32 : i32, i32
  }
  func.func @transform_1(%arg0: i32, %arg1: i32) -> (i32, i32) {
    %c0_i32 = arith.constant 0 : i32
    %c0_i32_0 = arith.constant 0 : i32
    return %c0_i32, %arg1 : i32, i32
  }
  func.func @transform_2(%arg0: i32, %arg1: i32) -> (i32, i32) {
    %c0_i32 = arith.constant 0 : i32
    %c0_i32_0 = arith.constant 0 : i32
    return %c0_i32, %arg1 : i32, i32
  }
  func.func @transform_3(%arg0: i32, %arg1: i32) -> (i32, i32) {
    %c0_i32 = arith.constant 0 : i32
    %c0_i32_0 = arith.constant 0 : i32
    return %arg1, %c0_i32 : i32, i32
  }
  func.func @transform_4(%arg0: i32, %arg1: i32) -> (i32, i32) {
    %c0_i32 = arith.constant 0 : i32
    %c0_i32_0 = arith.constant 0 : i32
    %c0_i32_1 = arith.constant 0 : i32
    return %c0_i32, %c0_i32_0 : i32, i32
  }
  func.func @transform_5(%arg0: i32, %arg1: i32) -> (i32, i32) {
    %c0_i32 = arith.constant 0 : i32
    %c0_i32_0 = arith.constant 0 : i32
    return %arg0, %c0_i32 : i32, i32
  }
}

</mosaic_0001>

<bundles_post_ra>
// kernel: tpu_custom_call.1
= control target key start
LH: loop header
LB: loop body
LE: loop exit
PB: predicated region body
PF: predicated region fallthrough
CT: control target
= control target key end

     0   :  { %10 = vsyncpa [#allocation4], 0  ;;  %s861_s0 = inlined_call_operand.hbm [shape: f32[16,128], index: 0, kind: input, shape index: {}]   ;;  %s862_s1 = inlined_call_operand.hbm [shape: bf16[128,256], index: 1, kind: input, shape index: {}]   ;;  %s863_s2 = inlined_call_operand.hbm [shape: f32[1,256], index: 2, kind: input, shape index: {}]   ;;  %s864_s3 = inlined_call_operand.hbm [shape: bf16[256,128], index: 3, kind: input, shape index: {}]   ;;  %s865_s4 = inlined_call_operand.hbm [shape: f32[1,128], index: 4, kind: input, shape index: {}]   ;;  %s866_s5 = inlined_call_operand.hbm [shape: f32[16,128], index: 5, kind: output, shape index: {}]  }
   0x1   :  { %11 = vsyncpa [#allocation7], 0 }
   0x2   :  { %12 = vsyncpa [#allocation10], 0 }
   0x3   :  { %13 = vsyncpa [#allocation5], 0  ;;  %s732_s18 = smov [#allocation6]   ;;  %s733_s20 = smov [#allocation9]  }
   0x4   :  { %s31_s19 = sshll.u32 %s732_s18, 4  ;;  %s53_s21 = sshll.u32 %s733_s20, 4  ;;  %s32_s19 = int_to_ptr.vmem [resolvable:$true] %s31_s19  ;;  %s773_s21 = int_to_ptr.vmem [resolvable:$true] %s53_s21 }
   0x5   :  { %s592_s24 = scalar_lea.hbm %s862_s1, 2048 }
   0x6   :  { %p593_p0 = scmp.ne.s32.totalorder %s862_s1, %s592_s24  ;;  %p596_p1 = scmp.lt.u32.totalorder %s592_s24, %s862_s1 }
   0x8   :  { %p598_p2 = pnand %p596_p1, %p593_p0 }
   0xa   :  { %601 = shalt.err (!%p598_p2)
}
   0xb   :  { %s602_s29 = scalar_lea.vmem %s32_s19, 2048  ;;  %p607_p4 = scmp.lt.s32.totalorder %s32_s19, %s32_s19 }
   0xc   :  { %p603_p3 = scmp.ne.s32.totalorder %s32_s19, %s602_s29  ;;  %p608_p5 = scmp.lt.s32.totalorder %s602_s29, %s602_s29 }
   0xe   :  { %p609_p6 = por %p608_p5, %p607_p4 }
  0x10   :  { %p610_p7 = pnand %p609_p6, %p603_p3 }
  0x12   :  { %613 = shalt.err (!%p610_p7)
}
  0x13   :  { %s734_s30 = smov 128   ;;  %s735_s6 = smov 8  }
  0x14   :  { %37 = dma.hbm_to_vmem [thread:$0]  %s862_s1, 2048, %s32_s19, [#allocation7], %s734_s30, %s734_s30, %s735_s6  }
  0x15   :  { %s614_s11 = scalar_lea.hbm %s864_s3, 2048 }
  0x16   :  { %p615_p8 = scmp.ne.s32.totalorder %s864_s3, %s614_s11  ;;  %p618_p9 = scmp.lt.u32.totalorder %s614_s11, %s864_s3 }
  0x18   :  { %p620_p10 = pnand %p618_p9, %p615_p8 }
  0x1a   :  { %623 = shalt.err (!%p620_p10)
}
  0x1b   :  { %s624_s16 = scalar_lea.vmem %s773_s21, 2048  ;;  %p629_p12 = scmp.lt.s32.totalorder %s773_s21, %s773_s21 }
  0x1c   :  { %p625_p11 = scmp.ne.s32.totalorder %s773_s21, %s624_s16  ;;  %p630_p13 = scmp.lt.s32.totalorder %s624_s16, %s624_s16 }
  0x1e   :  { %p631_p0 = por %p630_p13, %p629_p12 }
  0x20   :  { %p632_p1 = pnand %p631_p0, %p625_p11 }
  0x22   :  { %635 = shalt.err (!%p632_p1)
}
  0x23   :  { %s736_s1 = smov 64   ;;  %s737_s17 = smov 4  }
  0x24   :  { %59 = dma.hbm_to_vmem [thread:$0]  %s864_s3, 2048, %s773_s21, [#allocation10], %s736_s1, %s736_s1, %s737_s17  }
  0x25   :  { %s738_s20 = smov [#allocation3]   ;;  %s739_s23 = smov [#allocation8]  }
  0x26   :  { %s19_s22 = sshll.u32 %s738_s20, 4  ;;  %s44_s24 = sshll.u32 %s739_s23, 4  ;;  %s20_s22 = int_to_ptr.vmem [resolvable:$true] %s19_s22  ;;  %s45_s24 = int_to_ptr.vmem [resolvable:$true] %s44_s24 }
  0x27   :  { %s636_s27 = scalar_lea.hbm %s861_s0, 256 }
  0x28   :  { %p637_p2 = scmp.ne.s32.totalorder %s861_s0, %s636_s27  ;;  %p640_p3 = scmp.lt.u32.totalorder %s636_s27, %s861_s0 }
  0x2a   :  { %p642_p4 = pnand %p640_p3, %p637_p2 }
  0x2c   :  { %645 = shalt.err (!%p642_p4)
}
  0x2d   :  { %s646_s3 = scalar_lea.vmem %s20_s22, 256  ;;  %p651_p6 = scmp.lt.s32.totalorder %s20_s22, %s20_s22 }
  0x2e   :  { %p647_p5 = scmp.ne.s32.totalorder %s20_s22, %s646_s3  ;;  %p652_p7 = scmp.lt.s32.totalorder %s646_s3, %s646_s3 }
  0x30   :  { %p653_p8 = por %p652_p7, %p651_p6 }
  0x32   :  { %p654_p9 = pnand %p653_p8, %p647_p5 }
  0x34   :  { %657 = shalt.err (!%p654_p9)
}
  0x35   :  { %25 = dma.hbm_to_vmem [thread:$0]  %s861_s0, 256, %s20_s22, [#allocation4], %s734_s30, %s734_s30, %s735_s6  }
  0x36   :  { %s658_s12 = scalar_lea.hbm %s863_s2, 32 }
  0x37   :  { %p659_p10 = scmp.ne.s32.totalorder %s863_s2, %s658_s12  ;;  %p662_p11 = scmp.lt.u32.totalorder %s658_s12, %s863_s2 }
  0x39   :  { %p664_p12 = pnand %p662_p11, %p659_p10 }
  0x3b   :  { %667 = shalt.err (!%p664_p12)
}
  0x3c   :  { %s668_s1 = scalar_lea.vmem %s45_s24, 32  ;;  %p673_p0 = scmp.lt.s32.totalorder %s45_s24, %s45_s24 }
  0x3d   :  { %p669_p13 = scmp.ne.s32.totalorder %s45_s24, %s668_s1  ;;  %p674_p1 = scmp.lt.s32.totalorder %s668_s1, %s668_s1 }
  0x3f   :  { %p675_p2 = por %p674_p1, %p673_p0 }
  0x41   :  { %p676_p3 = pnand %p675_p2, %p669_p13 }
  0x43   :  { %679 = shalt.err (!%p676_p3)
}
  0x44   :  { %47 = dma.hbm_to_vmem [thread:$0]  %s863_s2, 32, %s45_s24, [#allocation7]  }
  0x45   :  { %s740_s18 = smov [#allocation11]   ;;  %s680_s23 = scalar_lea.hbm %s865_s4, 16 }
  0x46   :  { %s66_s19 = sshll.u32 %s740_s18, 4  ;;  %p681_p4 = scmp.ne.s32.totalorder %s865_s4, %s680_s23  ;;  %s67_s19 = int_to_ptr.vmem [resolvable:$true] %s66_s19 }
  0x47   :  { %p684_p5 = scmp.lt.u32.totalorder %s680_s23, %s865_s4 }
  0x49   :  { %p686_p6 = pnand %p684_p5, %p681_p4 }
  0x4b   :  { %689 = shalt.err (!%p686_p6)
}
  0x4c   :  { %s690_s29 = scalar_lea.vmem %s67_s19, 16  ;;  %s694_s2 = scalar_lea.vmem %s67_s19, 32 }
  0x4d   :  { %p691_p7 = scmp.ne.s32.totalorder %s67_s19, %s690_s29  ;;  %p695_p8 = scmp.lt.s32.totalorder %s67_s19, %s67_s19 }
  0x4e   :  { %p696_p9 = scmp.lt.s32.totalorder %s694_s2, %s690_s29 }
  0x50   :  { %p697_p10 = por %p696_p9, %p695_p8 }
  0x52   :  { %p698_p11 = pnand %p697_p10, %p691_p7 }
  0x54   :  { %701 = shalt.err (!%p698_p11)
}
  0x55   :  { %69 = dma.hbm_to_vmem [thread:$0]  %s865_s4, 16, %s67_s19, [#allocation10]  }
  0x56   :  { %724 = dma.done.wait [#allocation4], 256  }
  0x57   :  { %725 = vsyncadd [#allocation4], 4294967040 }
  0x58   :  { %726 = dma.done.wait [#allocation7], 2080  }
  0x59   :  { %727 = vsyncadd [#allocation7], 4294965216 }
  0x5a   :  { %728 = dma.done.wait [#allocation10], 2064  }
  0x5b   :  { %729 = vsyncadd [#allocation10], 4294965232  ;;  %v741_v0 = vmov 0   ;;  %v544_v1 = vld [vmem:[#allocation6 + $0x4] ss:$8 sps:$4 sm:$0xff]   ;;  %v92_v21 = vld [vmem:[#allocation3] sm:$0xff]  ;;  %v113_v36 = vlaneseq }
  0x5c   :  { %235 = vmatprep.mubr.bf16.mxu0 %v741_v0  ;;  %v546_v2 = vld [vmem:[#allocation6] ss:$8 sps:$4 sm:$0xff]   ;;  %203 = vmatprep.subr.bf16.mxu0 %v544_v1  ;;  %v547_v3 = vld [vmem:[#allocation6 + $0x14] ss:$8 sps:$4 sm:$0xff]   ;;  %v549_v4 = vld [vmem:[#allocation6 + $0x10] ss:$8 sps:$4 sm:$0xff]  }
  0x5d   :  { %204 = vmatpush1.bf16.msra.mxu0 %v546_v2  ;;  %v550_v5 = vld [vmem:[#allocation6 + $0x24] ss:$8 sps:$4 sm:$0xff]   ;;  %v552_v6 = vld [vmem:[#allocation6 + $0x20] ss:$8 sps:$4 sm:$0xff]   ;;  %v553_v7 = vld [vmem:[#allocation6 + $0x34] ss:$8 sps:$4 sm:$0xff]  }
  0x5e   :  { %205 = vmatprep.subr.bf16.mxu0 %v547_v3  ;;  %v555_v8 = vld [vmem:[#allocation6 + $0x30] ss:$8 sps:$4 sm:$0xff]   ;;  %v556_v9 = vld [vmem:[#allocation6 + $0x44] ss:$8 sps:$4 sm:$0xff]   ;;  %v558_v11 = vld [vmem:[#allocation6 + $0x40] ss:$8 sps:$4 sm:$0xff]  }
  0x5f   :  { %v568_v10 = vld [vmem:[#allocation9 + $0x40] sm:$0xff]   ;;  %v570_v13 = vld [vmem:[#allocation9 + $0x48] sm:$0xff]   ;;  %v559_v14 = vld [vmem:[#allocation6 + $0x54] ss:$8 sps:$4 sm:$0xff]   ;;  %v114_v37 = vshrl.u32 %v113_v36, 7  ;;  %s742_s4 = smov [#allocation12]  }
  0x60   :  { %v569_v12 = vld [vmem:[#allocation9] sm:$0xff]   ;;  %511 = vmatprep.subr.bf16.mxu1 %v568_v10  ;;  %v571_v15 = vld [vmem:[#allocation9 + $0x8] sm:$0xff]   ;;  %v565_v19 = vld [vmem:[#allocation6 + $0x74] ss:$8 sps:$4 sm:$0xff]   ;;  %s464_s8 = sshll.u32 %s742_s4, 4  ;;  %s465_s8 = int_to_ptr.vmem [resolvable:$true] %s464_s8 }
  0x61   :  { %206 = vmatpush1.bf16.msra.mxu0 %v549_v4  ;;  %512 = vmatpush3.bf16.msra.mxu1 %v569_v12  ;;  %v561_v16 = vld [vmem:[#allocation6 + $0x50] ss:$8 sps:$4 sm:$0xff]   ;;  %v562_v17 = vld [vmem:[#allocation6 + $0x64] ss:$8 sps:$4 sm:$0xff]   ;;  %v564_v18 = vld [vmem:[#allocation6 + $0x60] ss:$8 sps:$4 sm:$0xff]   ;;  %p707_p13 = scmp.lt.s32.totalorder %s465_s8, %s465_s8 }
  0x62   :  { %207 = vmatprep.subr.bf16.mxu0 %v550_v5  ;;  %513 = vmatprep.subr.bf16.mxu1 %v570_v13  ;;  %v567_v20 = vld [vmem:[#allocation6 + $0x70] ss:$8 sps:$4 sm:$0xff]   ;;  %v576_v28 = vld [vmem:[#allocation9 + $0x60] sm:$0xff]   ;;  %v115_v38 = vsub.s32 0, %v114_v37  ;;  %v111_v39 = vld [vmem:[#allocation8] sm:$0x3] }
  0x63   :  { %v93_v22 = vld [vmem:[#allocation3 + $0x8] sm:$0xff]  ;;  %v577_v29 = vld [vmem:[#allocation9 + $0x20] sm:$0xff]   ;;  %v578_v30 = vld [vmem:[#allocation9 + $0x68] sm:$0xff]   ;;  %v119_v40 = vsub.s32 1, %v114_v37  ;;  %s702_s3 = scalar_lea.vmem %s465_s8, 256 }
  0x64   :  { %v94_v23 = vpack.c.bf16 %v93_v22, %v92_v21  ;;  %v572_v24 = vld [vmem:[#allocation9 + $0x50] sm:$0xff]   ;;  %v574_v26 = vld [vmem:[#allocation9 + $0x58] sm:$0xff]   ;;  %v579_v31 = vld [vmem:[#allocation9 + $0x28] sm:$0xff]   ;;  %v116_v41 = vrot.slane %v111_v39, %v115_v38  ;;  %p703_p12 = scmp.ne.s32.totalorder %s465_s8, %s702_s3  ;;  %p708_p0 = scmp.lt.s32.totalorder %s702_s3, %s702_s3 }
  0x65   :  { %208 = vmatpush1.bf16.msra.mxu0 %v552_v6  ;;  %514 = vmatpush3.bf16.msra.mxu1 %v571_v15  ;;  %v573_v25 = vld [vmem:[#allocation9 + $0x10] sm:$0xff]   ;;  %v575_v27 = vld [vmem:[#allocation9 + $0x18] sm:$0xff]   ;;  %v120_v42 = vrot.slane %v111_v39, %v119_v40 }
  0x66   :  { %209 = vmatprep.subr.bf16.mxu0 %v553_v7  ;;  %515 = vmatprep.subr.bf16.mxu1 %v572_v24  ;;  %v580_v32 = vld [vmem:[#allocation9 + $0x70] sm:$0xff]   ;;  %v582_v34 = vld [vmem:[#allocation9 + $0x78] sm:$0xff]   ;;  %p709_p1 = por %p708_p0, %p707_p13 }
  0x67   :  { %v581_v33 = vld [vmem:[#allocation9 + $0x30] sm:$0xff]   ;;  %v583_v35 = vld [vmem:[#allocation9 + $0x38] sm:$0xff]  }
  0x68   :  { %p710_p2 = pnand %p709_p1, %p703_p12 }
  0x69   :  { %210 = vmatpush1.bf16.msra.mxu0 %v555_v8  ;;  %516 = vmatpush3.bf16.msra.mxu1 %v573_v25 }
  0x6a   :  { %211 = vmatprep.subr.bf16.mxu0 %v556_v9  ;;  %517 = vmatprep.subr.bf16.mxu1 %v574_v26 }
  0x6d   :  { %212 = vmatpush1.bf16.msra.mxu0 %v558_v11  ;;  %518 = vmatpush3.bf16.msra.mxu1 %v575_v27  ;;  %v510_v11 = vld [vmem:[#allocation11] ss:$0 sm:$0xff] }
  0x6e   :  { %213 = vmatprep.subr.bf16.mxu0 %v559_v14  ;;  %519 = vmatprep.subr.bf16.mxu1 %v576_v28 }
  0x71   :  { %214 = vmatpush1.bf16.msra.mxu0 %v561_v16  ;;  %520 = vmatpush3.bf16.msra.mxu1 %v577_v29 }
  0x72   :  { %215 = vmatprep.subr.bf16.mxu0 %v562_v17  ;;  %521 = vmatprep.subr.bf16.mxu1 %v578_v30 }
  0x75   :  { %216 = vmatpush1.bf16.msra.mxu0 %v564_v18  ;;  %522 = vmatpush3.bf16.msra.mxu1 %v579_v31 }
  0x76   :  { %217 = vmatprep.subr.bf16.mxu0 %v565_v19  ;;  %523 = vmatprep.subr.bf16.mxu1 %v580_v32 }
  0x79   :  { %218 = vmatpush1.bf16.msra.mxu0 %v567_v20  ;;  %524 = vmatpush3.bf16.msra.mxu1 %v581_v33 }
  0x7a   :  { %525 = vmatprep.subr.bf16.mxu1 %v582_v34 }
  0x7c   :  { %236 = vmatmul.mubr.bf16.vlgmr.msra.gmra.mrb[0].mxu0 %v94_v23 }
  0x7d   :  { %526 = vmatpush3.bf16.msra.mxu1 %v583_v35 }
 0x14f   :  { %v237_v43 = vpop.f32.mrb[0].mxu0 }
 0x150   :  { %v238_v44 = vadd.f32 %v237_v43, %v116_v41  ;;  %v239_v45 = vpop.f32.mrb[1].mxu0 }
 0x151   :  { %v240_v46 = vadd.f32 %v239_v45, %v120_v42  ;;  %v241_v47 = vpop.f32.mrb[2].mxu0 }
 0x152   :  { %v250_v48 = vmul.f32 0.70710677, %v238_v44  ;;  %v242_v49 = vadd.f32 %v241_v47, %v116_v41  ;;  %v243_v50 = vpop.f32.mrb[3].mxu0  ;;  %v246_v61 = vmul.f32 0.5, %v238_v44 }
 0x153   :  { %v251_v51 = vmul.f32 0.70710677, %v240_v46  ;;  %v244_v52 = vadd.f32 %v243_v50, %v120_v42  ;;  %v247_v0 = vmul.f32 0.5, %v240_v46 }
 0x154   :  { %584 = verf.f32 %v250_v48  ;;  %v252_v53 = vmul.f32 0.70710677, %v242_v49  ;;  %v248_v62 = vmul.f32 0.5, %v242_v49 }
 0x155   :  { %586 = verf.f32 %v251_v51  ;;  %v253_v54 = vmul.f32 0.70710677, %v244_v52  ;;  %v249_v1 = vmul.f32 0.5, %v244_v52 }
 0x156   :  { %588 = verf.f32 %v252_v53 }
 0x157   :  { %590 = verf.f32 %v253_v54 }
 0x15e   :  { %v585_v55 = vpop.eup %584 }
 0x15f   :  { %v587_v56 = vpop.eup %586  ;;  %v258_v57 = vadd.f32 1.0, %v585_v55 }
 0x160   :  { %v589_v58 = vpop.eup %588  ;;  %v259_v59 = vadd.f32 1.0, %v587_v56 }
 0x161   :  { %v591_v60 = vpop.eup %590  ;;  %v260_v63 = vadd.f32 1.0, %v589_v58  ;;  %v262_v3 = vmul.f32 %v258_v57, %v246_v61 }
 0x162   :  { %v261_v2 = vadd.f32 1.0, %v591_v60  ;;  %v263_v5 = vmul.f32 %v259_v59, %v247_v0 }
 0x163   :  { %v264_v4 = vmul.f32 %v260_v63, %v248_v62 }
 0x164   :  { %v265_v6 = vmul.f32 %v261_v2, %v249_v1 }
 0x165   :  { %v268_v7 = vpack.c.bf16 %v264_v4, %v262_v3 }
 0x166   :  { %v269_v8 = vpack.c.bf16 %v265_v6, %v263_v5 }
 0x168   :  { %430 = vmatprep.mubr.bf16.mxu1 %v269_v8 }
 0x169   :  { %431 = vmatmul.mubr.bf16.vlgmr.msra.gmra.mrb[0].mxu1 %v268_v7 }
 0x23c   :  { %v527_v9 = vpop.f32.mrb[0].mxu1 }
 0x23d   :  { %v528_v10 = vpop.f32.mrb[1].mxu1 }
 0x23e   :  { %v529_v12 = vadd.f32 %v528_v10, %v527_v9  ;;  %v530_v13 = vpop.f32.mrb[2].mxu1 }
 0x23f   :  { %v531_v14 = vpop.f32.mrb[3].mxu1 }
 0x240   :  { %v455_v15 = vadd.f32 %v529_v12, %v510_v11  ;;  %v532_v16 = vadd.f32 %v531_v14, %v530_v13 }
 0x242   :  { %457 = vst [vmem:[#allocation12] sm:$0xff] %v455_v15  ;;  %v456_v17 = vadd.f32 %v532_v16, %v510_v11 }
 0x244   :  { %458 = vst [vmem:[#allocation12 + $0x8] sm:$0xff] %v456_v17 }
 0x245   :  { %713 = shalt.err (!%p710_p2)
}
 0x246   :  { %s714_s10 = scalar_lea.hbm %s866_s5, 256 }
 0x247   :  { %p715_p3 = scmp.ne.s32.totalorder %s866_s5, %s714_s10  ;;  %p718_p4 = scmp.lt.u32.totalorder %s714_s10, %s866_s5 }
 0x249   :  { %p720_p5 = pnand %p718_p4, %p715_p3 }
 0x24b   :  { %723 = shalt.err (!%p720_p5)
}
 0x24c   :  { %470 = dma.vmem_to_hbm [thread:$0]  %s465_s8, 256, %s866_s5, [#allocation5], %s734_s30, %s734_s30, %s735_s6  }
 0x24d   :  { %730 = dma.done.wait [#allocation5], 256  }
 0x24e   :  { %731 = vsyncadd [#allocation5], 4294967040 }
 0x24f   :  { %474 = vsyncpa [#allocation4], 1 }
 0x250   :  { %475 = vsyncpa [#allocation7], 1 }
 0x251   :  { %476 = vsyncpa [#allocation10], 1 }
 0x252   :  { %477 = vsyncpa [#allocation5], 1 }

</bundles_post_ra>
